<compile_context>
chip_gen: v5e
topology: v5e:2x2
jax: 0.10.0
libtpu: 0.0.40
codegen_flags: <defaults>
</compile_context>

<pallas_src>
import functools

import jax
import jax.numpy as jnp
from jax.experimental import pallas as pl
from jax.experimental.pallas import tpu as pltpu

EPS = 1e-5


def _round_up(x, m):
    return ((x + m - 1) // m) * m


def mlp_kernel(d_in, h1, h2, min_val, max_val,
               x_ref, p1_ref, p2_ref, p3_ref, o_ref):
    """Fused BN-folded MLP: 3x (matmul + bias) + ReLU + softplus gate + clamp.

    p{k}_ref packs layer k as [W_k ; b_k] (bias is the last row); slices are
    static so they are zero-cost ref views.
    """
    x = x_ref[...]

    # Linear1 (BN already folded into W1/b1) -> ReLU (dropout = identity)
    h = jnp.dot(x, p1_ref[:d_in, :], preferred_element_type=jnp.float32)
    h = jnp.maximum(h + p1_ref[d_in:d_in + 1, :], 0.0)

    # Linear2 -> ReLU
    h = jnp.dot(h, p2_ref[:h1, :], preferred_element_type=jnp.float32)
    h = jnp.maximum(h + p2_ref[h1:h1 + 1, :], 0.0)

    # Final Linear
    out = jnp.dot(h, p3_ref[:h2, :], preferred_element_type=jnp.float32)
    out = out + p3_ref[h2:h2 + 1, :]

    # softplus gate (numerically stable, matches nn.Softplus(beta=1)) + min_val
    out = jnp.maximum(out, 0.0) + jnp.log1p(jnp.exp(-jnp.abs(out))) + min_val
    # lower clip bound is redundant: softplus(x) + min_val >= min_val
    out = jnp.minimum(out, max_val)

    o_ref[...] = out.astype(o_ref.dtype)


def prepare_params(params):
    """One-time param prep (hoisted out of the per-call path).

    Folds eval-mode BatchNorm1d into Linear1 (exact) and packs each layer as
    [W ; b] so every layer is a single DMA operand.
    """
    (gamma, beta, mean, var, w1, b1, w2, b2, w3, b3) = params
    d_in = w1.shape[0]

    # BN(x) = x * s + t,  s = gamma * rsqrt(var+eps),  t = beta - mean * s
    s = gamma * jax.lax.rsqrt(var + EPS)                  # (1, d_in)
    t = beta - mean * s                                   # (1, d_in)
    w1f = (w1 * s.reshape(d_in, 1)).astype(jnp.float32)   # (d_in, h1)
    b1f = (b1 + t @ w1).astype(jnp.float32)               # (1, h1)

    p1 = jnp.concatenate([w1f, b1f], axis=0)              # (d_in+1, h1)
    p2 = jnp.concatenate([w2, b2], axis=0).astype(jnp.float32)   # (h1+1, h2)
    p3 = jnp.concatenate([w3, b3], axis=0).astype(jnp.float32)   # (h2+1, d_out)
    return p1, p2, p3


def _pick_tile(n):
    """Batch tile: big enough to amortize ~0.35us/step overhead, small enough
    that the 1-D grid keeps >= 4 steps (so v7x's two TensorCores both get work
    and still pipeline); multiple of 8 for the sublane constraint."""
    tn = min(4096, _round_up(pl.cdiv(n, 4), 8))
    return max(tn, 8)


@functools.partial(jax.jit, static_argnames=("min_val", "max_val"))
def mlp_forward(x, p1, p2, p3, *, min_val=0.01, max_val=100.0):
    x = x.astype(jnp.float32)
    n, d_in = x.shape
    h1 = p1.shape[1]
    h2 = p2.shape[1]
    d_out = p3.shape[1]

    TN = _pick_tile(n)
    # No padding of x: Pallas handles the ragged last block; rows are
    # independent and out-of-bounds tail rows are never written back.
    grid = (pl.cdiv(n, TN),)

    kernel = functools.partial(mlp_kernel, d_in, h1, h2,
                               float(min_val), float(max_val))

    flops = 2 * n * (d_in * h1 + h1 * h2 + h2 * d_out)
    bytes_accessed = 4 * (n * d_in + n * d_out
                          + p1.size + p2.size + p3.size)

    return pl.pallas_call(
        kernel,
        out_shape=jax.ShapeDtypeStruct((n, d_out), jnp.float32),
        grid=grid,
        in_specs=[
            pl.BlockSpec((TN, d_in), lambda i: (i, 0)),   # x: tiled on batch
            pl.BlockSpec(p1.shape, lambda i: (0, 0)),     # weights VMEM-resident
            pl.BlockSpec(p2.shape, lambda i: (0, 0)),
            pl.BlockSpec(p3.shape, lambda i: (0, 0)),
        ],
        out_specs=pl.BlockSpec((TN, d_out), lambda i: (i, 0)),
        compiler_params=pltpu.CompilerParams(
            dimension_semantics=("parallel",)),           # v7x: 2 TCs
        cost_estimate=pl.CostEstimate(
            flops=flops,
            transcendentals=2 * n * d_out,                # exp + log1p
            bytes_accessed=bytes_accessed),
    )(x, p1, p2, p3)


def mlp_reference(x, params, *, min_val=0.01, max_val=100.0):
    """Pure-JAX reference of the PyTorch eval-mode forward pass."""
    (gamma, beta, mean, var, w1, b1, w2, b2, w3, b3) = params
    h = (x - mean) * (gamma / jnp.sqrt(var + EPS)) + beta
    h = jnp.maximum(h @ w1 + b1, 0.0)
    h = jnp.maximum(h @ w2 + b2, 0.0)
    out = h @ w3 + b3
    out = jax.nn.softplus(out) + min_val
    return jnp.clip(out, min_val, max_val)


def make_params(key, input_dim, hidden_dims, output_dim):
    """Deterministic synthetic parameters (not a checkpoint load)."""
    ks = jax.random.split(key, 16)
    # BatchNorm1d running stats / affine params, kept 2D (1, D) for TPU layout.
    gamma = 1.0 + 0.1 * jax.random.normal(ks[0], (1, input_dim), jnp.float32)
    beta = 0.1 * jax.random.normal(ks[1], (1, input_dim), jnp.float32)
    mean = 0.05 * jax.random.normal(ks[2], (1, input_dim), jnp.float32)
    var = jnp.abs(1.0 + 0.1 * jax.random.normal(ks[3], (1, input_dim),
                                                jnp.float32))

    dims = [input_dim] + list(hidden_dims) + [output_dim]
    ws, bs = [], []
    for i, (din, dout) in enumerate(zip(dims[:-1], dims[1:])):
        scale = 1.0 / jnp.sqrt(jnp.float32(din))
        w = scale * jax.random.normal(ks[4 + 2 * i], (din, dout), jnp.float32)
        b = scale * jax.random.normal(ks[5 + 2 * i], (1, dout), jnp.float32)
        ws.append(w)
        bs.append(b)

    return (gamma, beta, mean, var,
            ws[0], bs[0], ws[1], bs[1], ws[2], bs[2])


if __name__ == "__main__":
    # Module config (implied by __init__):
    #   input_dim=16, hidden_dims=[32, 32], output_dim=4,
    #   activation='relu', dropout_rate=0.1 (identity at eval),
    #   use_softplus=True, clip=True, min_val=0.01, max_val=100.0
    batch, input_dim, hidden_dims, output_dim = 8, 16, (32, 32), 4

    key = jax.random.PRNGKey(0)
    kx, kp = jax.random.split(key)
    x = jax.random.normal(kx, (batch, input_dim), jnp.float32)
    params = make_params(kp, input_dim, hidden_dims, output_dim)

    # Param prep (BN fold + packing) done once, outside the per-call path.
    p1, p2, p3 = prepare_params(params)
    p1, p2, p3 = jax.block_until_ready((p1, p2, p3))

    out = mlp_forward(x, p1, p2, p3, min_val=0.01, max_val=100.0)
    out = jax.block_until_ready(out)

    ref = mlp_reference(x, params, min_val=0.01, max_val=100.0)

    assert out.shape == (batch, output_dim)
    assert bool(jnp.all(out >= 0.01)) and bool(jnp.all(out <= 100.0))
    assert bool(jnp.allclose(out, ref, rtol=1e-4, atol=1e-5)), (
        float(jnp.max(jnp.abs(out - ref))))
    print("KERNEL_OK")
</pallas_src>

<mosaic_0001>
module attributes {stable_mosaic.version = 11 : i64} {
  func.func @mlp_kernel(%arg0: i32, %arg1: memref<8x16xf32, #tpu.memory_space<vmem>>, %arg2: memref<17x32xf32, #tpu.memory_space<vmem>>, %arg3: memref<33x32xf32, #tpu.memory_space<vmem>>, %arg4: memref<33x4xf32, #tpu.memory_space<vmem>>, %arg5: memref<8x4xf32, #tpu.memory_space<vmem>>) attributes {dimension_semantics = [#tpu.dimension_semantics<parallel>], iteration_bounds = array<i64: 1>, scalar_prefetch = 0 : i64, scratch_operands = 0 : i64, tpu.core_type = #tpu.core_type<tc>, window_params = [{transform_indices = @transform_0, window_bounds = array<i64: 8, 16>}, {pipeline_mode = #tpu.pipeline_mode<synchronous>, transform_indices = @transform_1, window_bounds = array<i64: 17, 32>}, {pipeline_mode = #tpu.pipeline_mode<synchronous>, transform_indices = @transform_2, window_bounds = array<i64: 33, 32>}, {pipeline_mode = #tpu.pipeline_mode<synchronous>, transform_indices = @transform_3, window_bounds = array<i64: 33, 4>}, {transform_indices = @transform_4, window_bounds = array<i64: 8, 4>}]} {
    %c0 = arith.constant 0 : index
    %c0_0 = arith.constant 0 : index
    %0 = vector.load %arg1[%c0, %c0_0] : memref<8x16xf32, #tpu.memory_space<vmem>>, vector<8x16xf32>
    %c0_1 = arith.constant 0 : index
    %c0_2 = arith.constant 0 : index
    %1 = vector.load %arg2[%c0_1, %c0_2] : memref<17x32xf32, #tpu.memory_space<vmem>>, vector<16x32xf32>
    %cst = arith.constant dense<0.000000e+00> : vector<8x32xf32>
    %2 = tpu.matmul %0, %1, %cst {dimension_numbers = #tpu.dot_dimension_numbers<[1], [0], [0], [1], [0, 0, 1, 1], [], []>} : vector<8x16xf32>, vector<16x32xf32>, vector<8x32xf32> -> vector<8x32xf32>
    %c16 = arith.constant 16 : index
    %c0_3 = arith.constant 0 : index
    %3 = vector.load %arg2[%c16, %c0_3] : memref<17x32xf32, #tpu.memory_space<vmem>>, vector<1x32xf32>
    %4 = vector.broadcast %3 : vector<1x32xf32> to vector<8x32xf32>
    %5 = arith.addf %2, %4 : vector<8x32xf32>
    %cst_4 = arith.constant 0.000000e+00 : f32
    %6 = vector.broadcast %cst_4 : f32 to vector<8x32xf32>
    %7 = arith.maximumf %5, %6 : vector<8x32xf32>
    %c0_5 = arith.constant 0 : index
    %c0_6 = arith.constant 0 : index
    %8 = vector.load %arg3[%c0_5, %c0_6] : memref<33x32xf32, #tpu.memory_space<vmem>>, vector<32x32xf32>
    %cst_7 = arith.constant dense<0.000000e+00> : vector<8x32xf32>
    %9 = tpu.matmul %7, %8, %cst_7 {dimension_numbers = #tpu.dot_dimension_numbers<[1], [0], [0], [1], [0, 0, 1, 1], [], []>} : vector<8x32xf32>, vector<32x32xf32>, vector<8x32xf32> -> vector<8x32xf32>
    %c32 = arith.constant 32 : index
    %c0_8 = arith.constant 0 : index
    %10 = vector.load %arg3[%c32, %c0_8] : memref<33x32xf32, #tpu.memory_space<vmem>>, vector<1x32xf32>
    %11 = vector.broadcast %10 : vector<1x32xf32> to vector<8x32xf32>
    %12 = arith.addf %9, %11 : vector<8x32xf32>
    %cst_9 = arith.constant 0.000000e+00 : f32
    %13 = vector.broadcast %cst_9 : f32 to vector<8x32xf32>
    %14 = arith.maximumf %12, %13 : vector<8x32xf32>
    %c0_10 = arith.constant 0 : index
    %c0_11 = arith.constant 0 : index
    %15 = vector.load %arg4[%c0_10, %c0_11] : memref<33x4xf32, #tpu.memory_space<vmem>>, vector<32x4xf32>
    %cst_12 = arith.constant dense<0.000000e+00> : vector<8x4xf32>
    %16 = tpu.matmul %14, %15, %cst_12 {dimension_numbers = #tpu.dot_dimension_numbers<[1], [0], [0], [1], [0, 0, 1, 1], [], []>} : vector<8x32xf32>, vector<32x4xf32>, vector<8x4xf32> -> vector<8x4xf32>
    %c32_13 = arith.constant 32 : index
    %c0_14 = arith.constant 0 : index
    %17 = vector.load %arg4[%c32_13, %c0_14] : memref<33x4xf32, #tpu.memory_space<vmem>>, vector<1x4xf32>
    %18 = vector.broadcast %17 : vector<1x4xf32> to vector<8x4xf32>
    %19 = arith.addf %16, %18 : vector<8x4xf32>
    %cst_15 = arith.constant 0.000000e+00 : f32
    %20 = vector.broadcast %cst_15 : f32 to vector<8x4xf32>
    %21 = arith.maximumf %19, %20 : vector<8x4xf32>
    %22 = math.absf %19 : vector<8x4xf32>
    %cst_16 = arith.constant 0.000000e+00 : f32
    %23 = vector.broadcast %cst_16 : f32 to vector<8x4xf32>
    %24 = arith.subf %23, %22 : vector<8x4xf32>
    %25 = math.exp %24 : vector<8x4xf32>
    %26 = math.log1p %25 : vector<8x4xf32>
    %27 = arith.addf %21, %26 : vector<8x4xf32>
    %cst_17 = arith.constant 0.00999999977 : f32
    %28 = vector.broadcast %cst_17 : f32 to vector<8x4xf32>
    %29 = arith.addf %27, %28 : vector<8x4xf32>
    %cst_18 = arith.constant 1.000000e+02 : f32
    %30 = vector.broadcast %cst_18 : f32 to vector<8x4xf32>
    %31 = arith.minimumf %29, %30 : vector<8x4xf32>
    %c0_19 = arith.constant 0 : index
    %c0_20 = arith.constant 0 : index
    %32 = vector.load %arg5[%c0_19, %c0_20] : memref<8x4xf32, #tpu.memory_space<vmem>>, vector<8x4xf32>
    tpu.vector_store %arg5[%c0_19, %c0_20], %31 {strides = array<i32>} : memref<8x4xf32, #tpu.memory_space<vmem>>, vector<8x4xf32>,
    return
  }
  func.func @transform_0(%arg0: i32) -> (i32, i32) {
    %c0_i32 = arith.constant 0 : i32
    %c0_i32_0 = arith.constant 0 : i32
    return %arg0, %c0_i32 : i32, i32
  }
  func.func @transform_1(%arg0: i32) -> (i32, i32) {
    %c0_i32 = arith.constant 0 : i32
    %c0_i32_0 = arith.constant 0 : i32
    %c0_i32_1 = arith.constant 0 : i32
    return %c0_i32, %c0_i32_0 : i32, i32
  }
  func.func @transform_2(%arg0: i32) -> (i32, i32) {
    %c0_i32 = arith.constant 0 : i32
    %c0_i32_0 = arith.constant 0 : i32
    %c0_i32_1 = arith.constant 0 : i32
    return %c0_i32, %c0_i32_0 : i32, i32
  }
  func.func @transform_3(%arg0: i32) -> (i32, i32) {
    %c0_i32 = arith.constant 0 : i32
    %c0_i32_0 = arith.constant 0 : i32
    %c0_i32_1 = arith.constant 0 : i32
    return %c0_i32, %c0_i32_0 : i32, i32
  }
  func.func @transform_4(%arg0: i32) -> (i32, i32) {
    %c0_i32 = arith.constant 0 : i32
    %c0_i32_0 = arith.constant 0 : i32
    return %arg0, %c0_i32 : i32, i32
  }
}

</mosaic_0001>

<bundles_post_ra>
// kernel: mlp_forward.1
= control target key start
LH: loop header
LB: loop body
LE: loop exit
PB: predicated region body
PF: predicated region fallthrough
CT: control target
= control target key end

     0   :  { %vm22_vm0 = vcmask 130048   ;;  %vm53_vm1 = vcmask 261120   ;;  %vm124_vm3 = vcmask 31744   ;;  %s210_s1 = inlined_call_operand.vmem [shape: f32[17,32], index: 1, kind: input, shape index: {}]   ;;  %s211_s0 = inlined_call_operand.vmem [shape: f32[8,16], index: 0, kind: input, shape index: {}]   ;;  %s212_s2 = inlined_call_operand.vmem [shape: f32[33,32], index: 2, kind: input, shape index: {}]   ;;  %s213_s3 = inlined_call_operand.vmem [shape: f32[33,4], index: 3, kind: input, shape index: {}]   ;;  %s214_s4 = inlined_call_operand.vmem [shape: f32[8,4], index: 4, kind: output, shape index: {}]  }
   0x1   :  { %v19_v0 = vld [vmem:[%s210_s1 + $0x8] sm:$0xff]  ;;  %v18_v1 = vld [vmem:[%s210_s1] sm:$0xff]  ;;  %v50_v3 = vld [vmem:[%s212_s2 + $0x18] sm:$0xff] }
   0x2   :  { %40 = vmatpush.msra.mxu0 %v19_v0  ;;  %v17_v2 = vld [vmem:[%s211_s0] sm:$0xff]  ;;  %69 = vmatpush.msra.mxu1 %v50_v3  ;;  %v49_v4 = vld [vmem:[%s212_s2 + $0x10] sm:$0xff]  ;;  %v48_v5 = vld [vmem:[%s212_s2 + $0x8] sm:$0xff] }
   0x3   :  { %v47_v6 = vld [vmem:[%s212_s2] sm:$0xff]  ;;  %v81_v7 = vld [vmem:[%s213_s3 + $0x18] sm:$0xff]  ;;  %v133_v8 = vld [vmem:[%s210_s1 + $0x10] ss:$0 sm:$0xff] }
   0x4   :  { %41 = vmatpush.msra.mxu0 %v18_v1  ;;  %70 = vmatpush.msra.mxu1 %v49_v4  ;;  %v80_v12 = vld [vmem:[%s213_s3 + $0x10] sm:$0xff]  ;;  %v79_v13 = vld [vmem:[%s213_s3 + $0x8] sm:$0xff]  ;;  %v78_v14 = vld [vmem:[%s213_s3] sm:$0xff] }
   0x5   :  { %130 = vmatmul.msk.f32.vlgmr.msra.gmra.mxu0 %vm22_vm0, %v17_v2  ;;  %99 = vmatpush.msra.mxu2 %v81_v7  ;;  %v134_v15 = vld [vmem:[%s212_s2 + $0x20] ss:$0 sm:$0xff] }
   0x6   :  { %71 = vmatpush.msra.mxu1 %v48_v5  ;;  %v135_v19 = vld [vmem:[%s213_s3 + $0x20] ss:$0 sm:$0xff] }
   0x7   :  { %100 = vmatpush.msra.mxu2 %v80_v12 }
   0x8   :  { %72 = vmatpush.msra.mxu1 %v47_v6 }
   0x9   :  { %101 = vmatpush.msra.mxu2 %v79_v13 }
   0xb   :  { %102 = vmatpush.msra.mxu2 %v78_v14 }
  0x82   :  { %v43_v9 = vpop.f32.mrf.mxu0 }
  0x83   :  { %v44_v10 = vadd.f32 %v133_v8, %v43_v9 }
  0x85   :  { %v46_v11 = vmax.f32 %v44_v10, 0.0 }
  0x87   :  { %131 = vmatmul.msk.f32.vlgmr.msra.gmra.mxu1 %vm53_vm1, %v46_v11 }
 0x104   :  { %v74_v16 = vpop.f32.mrf.mxu1 }
 0x105   :  { %v75_v17 = vadd.f32 %v134_v15, %v74_v16 }
 0x107   :  { %v77_v18 = vmax.f32 %v75_v17, 0.0 }
 0x109   :  { %132 = vmatmul.msk.f32.vlgmr.msra.gmra.mxu2 %vm53_vm1, %v77_v18 }
 0x18c   :  { %v104_v20 = vpop.f32.mrf.mxu2 }
 0x18d   :  { %v105_v21 = vadd.f32 %v135_v19, %v104_v20 }
 0x18f   :  { %v108_v22 = vand.u32 2147483647, %v105_v21  ;;  %v107_v33 = vmax.f32 %v105_v21, 0.0 }
 0x191   :  { %v109_v23 = vsub.f32 0.0, %v108_v22 }
 0x193   :  { %v110_v24 = vmul.f32 1.442695, %v109_v23 }
 0x195   :  { %136 = vpow2.f32 %v110_v24 }
 0x19b   :  { %v137_v25 = vpop.eup %136 }
 0x19c   :  { %v112_v26 = vadd.f32 1.0, %v137_v25  ;;  %v115_v27 = vmul.f32 -0.5, %v137_v25  ;;  %v118_v29 = vand.u32 2147483647, %v137_v25 }
 0x19e   :  { %138 = vlog2.f32 %v112_v26  ;;  %v116_v28 = vadd.f32 1.0, %v115_v27  ;;  %vm119_vm2 = vcmp.lt.f32.partialorder %v118_v29, 0.0004427343 }
 0x1a0   :  { %v117_v32 = vmul.f32 %v137_v25, %v116_v28 }
 0x1a4   :  { %v139_v30 = vpop.eup %138 }
 0x1a5   :  { %v114_v31 = vmul.f32 0.6931472, %v139_v30 }
 0x1a7   :  { %v120_v34 = vsel %vm119_vm2, %v117_v32, %v114_v31 }
 0x1a8   :  { %v121_v35 = vadd.f32 %v120_v34, %v107_v33 }
 0x1aa   :  { %v122_v36 = vadd.f32 0.01, %v121_v35 }
 0x1ac   :  { %v123_v37 = vmin.f32 %v122_v36, 100.0 }
 0x1ae   :  { %125 = vst.msk [vmem:[%s214_s4] sm:$0xff] %vm124_vm3, %v123_v37 }

</bundles_post_ra>
